<compile_context>
chip_gen: v6e
topology: v6e:2x2x1
jax: 0.10.0
libtpu: 0.0.40
codegen_flags: <defaults>
</compile_context>

<pallas_src>
import jax
import jax.numpy as jnp
from jax.experimental import pallas as pl
from jax.experimental.pallas import tpu as pltpu

N_QUANTILES = 10
HIDDEN = 256
OUT_PAD = 128   # lane-dense padded output width (>= N_QUANTILES, multiple of 128)


def _round_up(x, m):
    return ((x + m - 1) // m) * m


def _num_tensorcores_per_chip():
    """2 on v7x (dual TensorCore per chip), 1 on v5e/v6e and as a safe fallback."""
    try:
        kind = jax.devices()[0].device_kind.lower().replace(" ", "")
    except Exception:
        return 1
    return 2 if ("v7" in kind or "tpu7" in kind) else 1


def _derive_batch_tile(B, batch_tile, num_tc):
    """Pick the batch tile size tb (rows) per the perf review.

    Single TC: one maximal tile (<= cap).  v7x: exactly 2 maximal tiles when the
    batch is big enough for both cores to matter; for huge batches, cap at
    ~1-2K rows so each grid step stays a cheap, VMEM-friendly slab.
    """
    ALIGN = 16                                   # bf16 sublane packing
    cap = _round_up(max(ALIGN, min(int(batch_tile), 2048)), ALIGN)
    per_core = B
    if num_tc >= 2 and B > 128:                  # v7x only: 2-way maximal split
        per_core = pl.cdiv(B, num_tc)
    tb = min(cap, _round_up(per_core, ALIGN))
    if tb >= 256:                                # full MXU M fill for big tiles
        tb = _round_up(tb, 128)
    return tb


def _mlp_kernel(x_ref, w1_ref, b1_ref, w2_ref, b2_ref, w3_ref, b3_ref, o_ref):
    """Fused 3-layer MLP for one batch tile; all weights resident in VMEM.

    fc1 runs in f32 (tiny K = state_dim + action_dim); fc2/fc3 run in the
    weights' dtype (bf16 by default) with f32 MXU accumulation.  Bias add and
    ReLU stay in f32.
    """
    cdt = w2_ref.dtype
    # fc1: single K=din dot (concat was done once in the wrapper).
    h1 = jnp.dot(x_ref[...], w1_ref[...],
                 preferred_element_type=jnp.float32) + b1_ref[...]
    h1 = jnp.maximum(h1, 0.0)
    # fc2
    h2 = jnp.dot(h1.astype(cdt), w2_ref[...],
                 preferred_element_type=jnp.float32) + b2_ref[...]
    h2 = jnp.maximum(h2, 0.0)
    # fc3 (output columns padded to OUT_PAD lanes -> unmasked full-lane stores)
    q = jnp.dot(h2.astype(cdt), w3_ref[...],
                preferred_element_type=jnp.float32) + b3_ref[...]
    o_ref[...] = q.astype(o_ref.dtype)


def quantile_critic_forward(state, action, params, *, batch_tile=1024,
                            matmul_dtype=jnp.bfloat16, out_dtype=None):
    """state: [B, S], action: [B, A] -> quantiles: [B, N_QUANTILES].

    Output dtype defaults to `matmul_dtype` (bf16 perf path, halves the padded
    writeback bytes); pass out_dtype=jnp.float32 (or matmul_dtype=jnp.float32)
    for a full-precision result.
    """
    w1, b1, w2, b2, w3, b3 = params
    B, S = state.shape
    A = action.shape[-1]
    din = S + A
    out_dtype = jnp.dtype(matmul_dtype if out_dtype is None else out_dtype)

    # ---- batch tiling (chip-aware: split only where there are 2 TensorCores).
    num_tc = _num_tensorcores_per_chip()
    tb = _derive_batch_tile(B, batch_tile, num_tc)
    Bp = _round_up(B, tb)
    grid = (Bp // tb,)

    # ---- one-time input / weight prep (outside the kernel).
    # Concat once in the wrapper -> single K=din matmul in the kernel.
    x = jnp.concatenate([state, action], axis=-1).astype(jnp.float32)
    if Bp != B:
        x = jnp.pad(x, ((0, Bp - B), (0, 0)))

    w1_c = w1.astype(jnp.float32)                # fc1 stays f32 (tiny K)
    b1_c = b1.astype(jnp.float32)
    w2_c = w2.astype(matmul_dtype)
    b2_c = b2.astype(jnp.float32)
    # Lane-dense output: zero-pad W3 / b3 from N_QUANTILES to OUT_PAD columns.
    w3_p = jnp.pad(w3, ((0, 0), (0, OUT_PAD - N_QUANTILES))).astype(matmul_dtype)
    b3_p = jnp.pad(b3, ((0, 0), (0, OUT_PAD - N_QUANTILES))).astype(jnp.float32)

    full = lambda i: (0, 0)
    w_itemsize = jnp.dtype(matmul_dtype).itemsize
    flops = 2 * Bp * (din * HIDDEN + HIDDEN * HIDDEN + HIDDEN * OUT_PAD)
    bytes_accessed = (
        Bp * din * 4                                             # x (f32)
        + din * HIDDEN * 4                                       # W1 (f32)
        + (HIDDEN * HIDDEN + HIDDEN * OUT_PAD) * w_itemsize      # W2, W3
        + (2 * HIDDEN + OUT_PAD) * 4                             # biases
        + Bp * OUT_PAD * out_dtype.itemsize                      # output
    )

    out = pl.pallas_call(
        _mlp_kernel,
        out_shape=jax.ShapeDtypeStruct((Bp, OUT_PAD), out_dtype),
        grid_spec=pltpu.PrefetchScalarGridSpec(
            num_scalar_prefetch=0,
            grid=grid,
            in_specs=[
                pl.BlockSpec((tb, din), lambda i: (i, 0)),      # x tile
                pl.BlockSpec((din, HIDDEN), full),              # W1
                pl.BlockSpec((1, HIDDEN), full),                # b1
                pl.BlockSpec((HIDDEN, HIDDEN), full),           # W2
                pl.BlockSpec((1, HIDDEN), full),                # b2
                pl.BlockSpec((HIDDEN, OUT_PAD), full),          # W3 (padded)
                pl.BlockSpec((1, OUT_PAD), full),               # b3 (padded)
            ],
            out_specs=pl.BlockSpec((tb, OUT_PAD), lambda i: (i, 0)),
        ),
        compiler_params=pltpu.CompilerParams(
            dimension_semantics=("parallel",),                  # shards grid over v7x's 2 TCs
        ),
        cost_estimate=pl.CostEstimate(flops=flops, transcendentals=0,
                                      bytes_accessed=bytes_accessed),
    )(x, w1_c, b1_c, w2_c, b2_c, w3_p, b3_p)

    # Under jit, XLA fuses this slice into the consumer; callers that can
    # consume the padded slab directly may skip it entirely.
    return out[:B, :N_QUANTILES]


def init_params(key, state_dim, action_dim):
    """Deterministic init mimicking torch.nn.Linear default (U[-1/sqrt(fan_in), +]).

    Weights stored transposed vs torch.nn.Linear: W has shape (in, out), so the
    kernel computes x @ W + b, matching torch's x @ weight.T + bias exactly.
    """
    din = state_dim + action_dim
    ks = jax.random.split(key, 6)

    def linear(kw, kb, fan_in, fan_out):
        bound = 1.0 / jnp.sqrt(jnp.float32(fan_in))
        w = jax.random.uniform(kw, (fan_in, fan_out), jnp.float32, -bound, bound)
        b = jax.random.uniform(kb, (1, fan_out), jnp.float32, -bound, bound)
        return w, b

    w1, b1 = linear(ks[0], ks[1], din, HIDDEN)
    w2, b2 = linear(ks[2], ks[3], HIDDEN, HIDDEN)
    w3, b3 = linear(ks[4], ks[5], HIDDEN, N_QUANTILES)
    return (w1, b1, w2, b2, w3, b3)


def reference_forward(state, action, params):
    """Pure-JAX f32 reference for correctness checks."""
    w1, b1, w2, b2, w3, b3 = params
    x = jnp.concatenate([state, action], axis=-1)
    x = jnp.maximum(x @ w1 + b1, 0.0)
    x = jnp.maximum(x @ w2 + b2, 0.0)
    return x @ w3 + b3


if __name__ == "__main__":
    key = jax.random.PRNGKey(0)
    k_state, k_action, k_params = jax.random.split(key, 3)

    batch, state_dim, action_dim = 8, 8, 4
    state = jax.random.normal(k_state, (batch, state_dim), jnp.float32)
    action = jax.random.normal(k_action, (batch, action_dim), jnp.float32)
    params = init_params(k_params, state_dim, action_dim)

    ref = reference_forward(state, action, params)

    # f32 matmul path: exact parity with the torch-style reference.
    q_f32 = jax.block_until_ready(
        quantile_critic_forward(state, action, params, matmul_dtype=jnp.float32))
    assert q_f32.shape == (batch, N_QUANTILES)
    assert q_f32.dtype == jnp.float32
    assert jnp.allclose(q_f32, ref, atol=1e-4, rtol=1e-4), "f32 mismatch vs reference"

    # Default perf path: bf16 fc2/fc3 matmuls, f32 accumulation, bf16 writeback.
    q_bf16 = jax.block_until_ready(quantile_critic_forward(state, action, params))
    assert q_bf16.shape == (batch, N_QUANTILES)
    assert jnp.allclose(q_bf16.astype(jnp.float32), ref, atol=3e-2, rtol=3e-2), \
        "bf16 mismatch vs reference"

    # Larger, non-divisible batch: exercises padding and (on v7x) the 2-way
    # maximal tile split; on v5e/v6e this is one single big tile.
    kb1, kb2 = jax.random.split(jax.random.PRNGKey(1))
    big_state = jax.random.normal(kb1, (300, state_dim), jnp.float32)
    big_action = jax.random.normal(kb2, (300, action_dim), jnp.float32)
    q_big = jax.block_until_ready(
        quantile_critic_forward(big_state, big_action, params))
    ref_big = reference_forward(big_state, big_action, params)
    assert q_big.shape == (300, N_QUANTILES)
    assert jnp.allclose(q_big.astype(jnp.float32), ref_big, atol=3e-2, rtol=3e-2), \
        "big-batch mismatch"

    print("KERNEL_OK")
</pallas_src>

<mosaic_0001>
module attributes {stable_mosaic.version = 11 : i64} {
  func.func @_mlp_kernel(%arg0: i32, %arg1: memref<16x12xf32, #tpu.memory_space<vmem>>, %arg2: memref<12x256xf32, #tpu.memory_space<vmem>>, %arg3: memref<1x256xf32, #tpu.memory_space<vmem>>, %arg4: memref<256x256xf32, #tpu.memory_space<vmem>>, %arg5: memref<1x256xf32, #tpu.memory_space<vmem>>, %arg6: memref<256x128xf32, #tpu.memory_space<vmem>>, %arg7: memref<1x128xf32, #tpu.memory_space<vmem>>, %arg8: memref<16x128xf32, #tpu.memory_space<vmem>>) attributes {dimension_semantics = [#tpu.dimension_semantics<parallel>], iteration_bounds = array<i64: 1>, scalar_prefetch = 0 : i64, scratch_operands = 0 : i64, tpu.core_type = #tpu.core_type<tc>, window_params = [{transform_indices = @transform_0, window_bounds = array<i64: 16, 12>}, {pipeline_mode = #tpu.pipeline_mode<synchronous>, transform_indices = @transform_1, window_bounds = array<i64: 12, 256>}, {pipeline_mode = #tpu.pipeline_mode<synchronous>, transform_indices = @transform_2, window_bounds = array<i64: 1, 256>}, {pipeline_mode = #tpu.pipeline_mode<synchronous>, transform_indices = @transform_3, window_bounds = array<i64: 256, 256>}, {pipeline_mode = #tpu.pipeline_mode<synchronous>, transform_indices = @transform_4, window_bounds = array<i64: 1, 256>}, {pipeline_mode = #tpu.pipeline_mode<synchronous>, transform_indices = @transform_5, window_bounds = array<i64: 256, 128>}, {pipeline_mode = #tpu.pipeline_mode<synchronous>, transform_indices = @transform_6, window_bounds = array<i64: 1, 128>}, {transform_indices = @transform_7, window_bounds = array<i64: 16, 128>}]} {
    %c0 = arith.constant 0 : index
    %c0_0 = arith.constant 0 : index
    %0 = vector.load %arg1[%c0, %c0_0] : memref<16x12xf32, #tpu.memory_space<vmem>>, vector<16x12xf32>
    %c0_1 = arith.constant 0 : index
    %c0_2 = arith.constant 0 : index
    %1 = vector.load %arg2[%c0_1, %c0_2] : memref<12x256xf32, #tpu.memory_space<vmem>>, vector<12x256xf32>
    %cst = arith.constant dense<0.000000e+00> : vector<16x256xf32>
    %2 = tpu.matmul %0, %1, %cst {dimension_numbers = #tpu.dot_dimension_numbers<[1], [0], [0], [1], [0, 0, 1, 1], [], []>} : vector<16x12xf32>, vector<12x256xf32>, vector<16x256xf32> -> vector<16x256xf32>
    %c0_3 = arith.constant 0 : index
    %c0_4 = arith.constant 0 : index
    %3 = vector.load %arg3[%c0_3, %c0_4] : memref<1x256xf32, #tpu.memory_space<vmem>>, vector<1x256xf32>
    %4 = vector.broadcast %3 : vector<1x256xf32> to vector<16x256xf32>
    %5 = arith.addf %2, %4 : vector<16x256xf32>
    %cst_5 = arith.constant 0.000000e+00 : f32
    %6 = vector.broadcast %cst_5 : f32 to vector<16x256xf32>
    %7 = arith.maximumf %5, %6 : vector<16x256xf32>
    %c0_6 = arith.constant 0 : index
    %c0_7 = arith.constant 0 : index
    %8 = vector.load %arg4[%c0_6, %c0_7] : memref<256x256xf32, #tpu.memory_space<vmem>>, vector<256x256xf32>
    %cst_8 = arith.constant dense<0.000000e+00> : vector<16x256xf32>
    %9 = tpu.matmul %7, %8, %cst_8 {dimension_numbers = #tpu.dot_dimension_numbers<[1], [0], [0], [1], [0, 0, 1, 1], [], []>} : vector<16x256xf32>, vector<256x256xf32>, vector<16x256xf32> -> vector<16x256xf32>
    %c0_9 = arith.constant 0 : index
    %c0_10 = arith.constant 0 : index
    %10 = vector.load %arg5[%c0_9, %c0_10] : memref<1x256xf32, #tpu.memory_space<vmem>>, vector<1x256xf32>
    %11 = vector.broadcast %10 : vector<1x256xf32> to vector<16x256xf32>
    %12 = arith.addf %9, %11 : vector<16x256xf32>
    %cst_11 = arith.constant 0.000000e+00 : f32
    %13 = vector.broadcast %cst_11 : f32 to vector<16x256xf32>
    %14 = arith.maximumf %12, %13 : vector<16x256xf32>
    %c0_12 = arith.constant 0 : index
    %c0_13 = arith.constant 0 : index
    %15 = vector.load %arg6[%c0_12, %c0_13] : memref<256x128xf32, #tpu.memory_space<vmem>>, vector<256x128xf32>
    %cst_14 = arith.constant dense<0.000000e+00> : vector<16x128xf32>
    %16 = tpu.matmul %14, %15, %cst_14 {dimension_numbers = #tpu.dot_dimension_numbers<[1], [0], [0], [1], [0, 0, 1, 1], [], []>} : vector<16x256xf32>, vector<256x128xf32>, vector<16x128xf32> -> vector<16x128xf32>
    %c0_15 = arith.constant 0 : index
    %c0_16 = arith.constant 0 : index
    %17 = vector.load %arg7[%c0_15, %c0_16] : memref<1x128xf32, #tpu.memory_space<vmem>>, vector<1x128xf32>
    %18 = vector.broadcast %17 : vector<1x128xf32> to vector<16x128xf32>
    %19 = arith.addf %16, %18 : vector<16x128xf32>
    %c0_17 = arith.constant 0 : index
    %c0_18 = arith.constant 0 : index
    %20 = vector.load %arg8[%c0_17, %c0_18] : memref<16x128xf32, #tpu.memory_space<vmem>>, vector<16x128xf32>
    tpu.vector_store %arg8[%c0_17, %c0_18], %19 {strides = array<i32>} : memref<16x128xf32, #tpu.memory_space<vmem>>, vector<16x128xf32>,
    return
  }
  func.func @transform_0(%arg0: i32) -> (i32, i32) {
    %c0_i32 = arith.constant 0 : i32
    %c0_i32_0 = arith.constant 0 : i32
    return %arg0, %c0_i32 : i32, i32
  }
  func.func @transform_1(%arg0: i32) -> (i32, i32) {
    %c0_i32 = arith.constant 0 : i32
    %c0_i32_0 = arith.constant 0 : i32
    %c0_i32_1 = arith.constant 0 : i32
    return %c0_i32, %c0_i32_0 : i32, i32
  }
  func.func @transform_2(%arg0: i32) -> (i32, i32) {
    %c0_i32 = arith.constant 0 : i32
    %c0_i32_0 = arith.constant 0 : i32
    %c0_i32_1 = arith.constant 0 : i32
    return %c0_i32, %c0_i32_0 : i32, i32
  }
  func.func @transform_3(%arg0: i32) -> (i32, i32) {
    %c0_i32 = arith.constant 0 : i32
    %c0_i32_0 = arith.constant 0 : i32
    %c0_i32_1 = arith.constant 0 : i32
    return %c0_i32, %c0_i32_0 : i32, i32
  }
  func.func @transform_4(%arg0: i32) -> (i32, i32) {
    %c0_i32 = arith.constant 0 : i32
    %c0_i32_0 = arith.constant 0 : i32
    %c0_i32_1 = arith.constant 0 : i32
    return %c0_i32, %c0_i32_0 : i32, i32
  }
  func.func @transform_5(%arg0: i32) -> (i32, i32) {
    %c0_i32 = arith.constant 0 : i32
    %c0_i32_0 = arith.constant 0 : i32
    %c0_i32_1 = arith.constant 0 : i32
    return %c0_i32, %c0_i32_0 : i32, i32
  }
  func.func @transform_6(%arg0: i32) -> (i32, i32) {
    %c0_i32 = arith.constant 0 : i32
    %c0_i32_0 = arith.constant 0 : i32
    %c0_i32_1 = arith.constant 0 : i32
    return %c0_i32, %c0_i32_0 : i32, i32
  }
  func.func @transform_7(%arg0: i32) -> (i32, i32) {
    %c0_i32 = arith.constant 0 : i32
    %c0_i32_0 = arith.constant 0 : i32
    return %arg0, %c0_i32 : i32, i32
  }
}

</mosaic_0001>

<bundles_post_ra>
// kernel: tpu_custom_call.1
= control target key start
LH: loop header
LB: loop body
LE: loop exit
PB: predicated region body
PF: predicated region fallthrough
CT: control target
= control target key end

     0   :  { %12 = vsyncpa [#allocation3], 0  ;;  %s739_s0 = inlined_call_operand.hbm [shape: f32[16,12], index: 0, kind: input, shape index: {}]   ;;  %s740_s1 = inlined_call_operand.hbm [shape: f32[12,256], index: 1, kind: input, shape index: {}]   ;;  %s741_s2 = inlined_call_operand.vmem [shape: f32[1,256], index: 2, kind: input, shape index: {}]   ;;  %s742_s3 = inlined_call_operand.hbm [shape: f32[256,256], index: 3, kind: input, shape index: {}]   ;;  %s743_s4 = inlined_call_operand.vmem [shape: f32[1,256], index: 4, kind: input, shape index: {}]   ;;  %s744_s5 = inlined_call_operand.hbm [shape: f32[256,128], index: 5, kind: input, shape index: {}]   ;;  %s745_s6 = inlined_call_operand.vmem [shape: f32[1,128], index: 6, kind: input, shape index: {}]   ;;  %s746_s7 = inlined_call_operand.hbm [shape: f32[16,128], index: 7, kind: output, shape index: {}]  }
   0x1   :  { %13 = vsyncpa [#allocation6], 0 }
   0x2   :  { %14 = vsyncpa [#allocation9], 0 }
   0x3   :  { %15 = vsyncpa [#allocation4], 0  ;;  %s648_s24 = smov [#allocation5]  }
   0x4   :  { %s33_s25 = sshll.u32 %s648_s24, 4  ;;  %s34_s25 = int_to_ptr.vmem [resolvable:$true] %s33_s25 }
   0x5   :  { %s548_s26 = scalar_lea.vmem %s34_s25, 512  ;;  %p553_p1 = scmp.lt.s32.totalorder %s34_s25, %s34_s25 }
   0x6   :  { %p549_p0 = scmp.ne.s32.totalorder %s34_s25, %s548_s26  ;;  %p554_p2 = scmp.lt.s32.totalorder %s548_s26, %s548_s26 }
   0x8   :  { %p555_p3 = por %p554_p2, %p553_p1 }
   0xa   :  { %p556_p4 = pnand %p555_p3, %p549_p0 }
   0xc   :  { %559 = shalt.err (!%p556_p4)
}
   0xd   :  { %s649_s27 = smov 256   ;;  %s650_s28 = smov 16  }
   0xe   :  { %39 = dma.hbm_to_vmem [thread:$0]  %s740_s1, 512, %s34_s25, [#allocation6], %s649_s27, %s649_s27, %s650_s28  }
   0xf   :  { %s651_s8 = smov [#allocation2]  }
  0x10   :  { %s21_s9 = sshll.u32 %s651_s8, 4  ;;  %s22_s9 = int_to_ptr.vmem [resolvable:$true] %s21_s9 }
  0x11   :  { %s568_s10 = scalar_lea.vmem %s22_s9, 256  ;;  %p573_p6 = scmp.lt.s32.totalorder %s22_s9, %s22_s9 }
  0x12   :  { %p569_p5 = scmp.ne.s32.totalorder %s22_s9, %s568_s10  ;;  %p574_p7 = scmp.lt.s32.totalorder %s568_s10, %s568_s10 }
  0x14   :  { %p575_p8 = por %p574_p7, %p573_p6 }
  0x16   :  { %p576_p9 = pnand %p575_p8, %p569_p5 }
  0x18   :  { %579 = shalt.err (!%p576_p9)
}
  0x19   :  { %s652_s11 = smov 128   ;;  %s653_s12 = smov 8  }
  0x1a   :  { %27 = dma.hbm_to_vmem [thread:$0]  %s739_s0, 256, %s22_s9, [#allocation3], %s652_s11, %s652_s11, %s653_s12  }
  0x1b   :  { %s654_s1 = smov [#allocation7]   ;;  %s655_s16 = smov [#allocation8]  }
  0x1c   :  { %s47_s15 = sshll.u32 %s654_s1, 4  ;;  %s61_s17 = sshll.u32 %s655_s16, 4  ;;  %s48_s15 = int_to_ptr.vmem [resolvable:$true] %s47_s15  ;;  %s62_s17 = int_to_ptr.vmem [resolvable:$true] %s61_s17 }
  0x1d   :  { %s588_s18 = scalar_lea.vmem %s48_s15, 8192  ;;  %p593_p11 = scmp.lt.s32.totalorder %s48_s15, %s48_s15 }
  0x1e   :  { %p589_p10 = scmp.ne.s32.totalorder %s48_s15, %s588_s18  ;;  %p594_p12 = scmp.lt.s32.totalorder %s588_s18, %s588_s18 }
  0x20   :  { %p595_p13 = por %p594_p12, %p593_p11 }
  0x22   :  { %p596_p0 = pnand %p595_p13, %p589_p10 }
  0x24   :  { %599 = shalt.err (!%p596_p0)
}
  0x25   :  { %53 = dma.hbm_to_vmem [thread:$0]  %s742_s3, 8192, %s48_s15, [#allocation6], %s649_s27, %s649_s27, %s650_s28  }
  0x26   :  { %s608_s0 = scalar_lea.vmem %s62_s17, 4096  ;;  %p613_p2 = scmp.lt.s32.totalorder %s62_s17, %s62_s17 }
  0x27   :  { %p609_p1 = scmp.ne.s32.totalorder %s62_s17, %s608_s0  ;;  %p614_p3 = scmp.lt.s32.totalorder %s608_s0, %s608_s0 }
  0x29   :  { %p615_p4 = por %p614_p3, %p613_p2 }
  0x2b   :  { %p616_p5 = pnand %p615_p4, %p609_p1 }
  0x2d   :  { %619 = shalt.err (!%p616_p5)
}
  0x2e   :  { %67 = dma.hbm_to_vmem [thread:$0]  %s744_s5, 4096, %s62_s17, [#allocation9], %s652_s11, %s652_s11, %s653_s12  }
  0x2f   :  { %640 = dma.done.wait [#allocation3], 256  }
  0x30   :  { %641 = vsyncadd [#allocation3], 4294967040 }
  0x31   :  { %642 = dma.done.wait [#allocation6], 8704  }
  0x32   :  { %643 = vsyncadd [#allocation6], 4294958592 }
  0x33   :  { %644 = dma.done.wait [#allocation9], 4096  }
  0x34   :  { %645 = vsyncadd [#allocation9], 4294963200  ;;  %v656_v0 = vmov 0.0   ;;  %vm107_vm0 = vcmask 1043456   ;;  %v87_v1 = vld [vmem:[#allocation5 + $0x18] sm:$0xf] }
  0x35   :  { %178 = vmatprep.mubr.f32.mxu0 %v656_v0  ;;  %v86_v2 = vld [vmem:[#allocation5 + $0x10] sm:$0xf]  ;;  %v85_v3 = vld [vmem:[#allocation5 + $0x8] sm:$0xff]  ;;  %487 = vmatprep.subr.msk.mxu0 %vm107_vm0, %v87_v1  ;;  %v84_v4 = vld [vmem:[#allocation5] sm:$0xff]  ;;  %vm100_vm1 = vcmask 97280   ;;  %s657_s25 = smov [#allocation10]  }
  0x36   :  { %v82_v5 = vld [vmem:[#allocation2] sm:$0xff]  ;;  %488 = vmatpush1.msk.msra.mxu0 %vm107_vm0, %v86_v2  ;;  %v226_v6 = vld [vmem:[#allocation7 + $0xf8] sm:$0xff]  ;;  %v224_v8 = vld [vmem:[#allocation7 + $0xe8] sm:$0xff]  ;;  %s473_s26 = sshll.u32 %s657_s25, 4  ;;  %s474_s26 = int_to_ptr.vmem [resolvable:$true] %s473_s26 }
  0x37   :  { %v225_v7 = vld [vmem:[#allocation7 + $0xf0] sm:$0xff]  ;;  %144 = vmatprep.subr.mxu0 %v85_v3  ;;  %271 = vmatprep.subr.mxu1 %v226_v6  ;;  %v223_v9 = vld [vmem:[#allocation7 + $0xe0] sm:$0xff]  ;;  %v222_v10 = vld [vmem:[#allocation7 + $0xd8] sm:$0xff]  ;;  %s620_s27 = scalar_lea.vmem %s474_s26, 256  ;;  %p625_p7 = scmp.lt.s32.totalorder %s474_s26, %s474_s26 }
  0x38   :  { %145 = vmatpush1.msra.mxu0 %v84_v4  ;;  %272 = vmatpush1.msra.mxu1 %v225_v7  ;;  %v221_v11 = vld [vmem:[#allocation7 + $0xd0] sm:$0xff]  ;;  %v83_v12 = vld [vmem:[#allocation2 + $0x8] sm:$0xff]  ;;  %v220_v13 = vld [vmem:[#allocation7 + $0xc8] sm:$0xff]  ;;  %p621_p6 = scmp.ne.s32.totalorder %s474_s26, %s620_s27  ;;  %p626_p8 = scmp.lt.s32.totalorder %s620_s27, %s620_s27 }
  0x39   :  { %489 = vmatmul.mubr.msk.f32.vlgmr.msra.gmra.mxu0 %vm100_vm1, %v82_v5  ;;  %273 = vmatprep.subr.mxu1 %v224_v8  ;;  %v219_v14 = vld [vmem:[#allocation7 + $0xc0] sm:$0xff]  ;;  %v218_v15 = vld [vmem:[#allocation7 + $0xb8] sm:$0xff]  ;;  %v217_v16 = vld [vmem:[#allocation7 + $0xb0] sm:$0xff] }
  0x3a   :  { %184 = vmatprep.mubr.f32.mxu0 %v656_v0  ;;  %274 = vmatpush1.msra.mxu1 %v223_v9  ;;  %v216_v17 = vld [vmem:[#allocation7 + $0xa8] sm:$0xff]  ;;  %v215_v18 = vld [vmem:[#allocation7 + $0xa0] sm:$0xff]  ;;  %v214_v19 = vld [vmem:[#allocation7 + $0x98] sm:$0xff]  ;;  %p627_p9 = por %p626_p8, %p625_p7 }
  0x3b   :  { %275 = vmatprep.subr.mxu1 %v222_v10  ;;  %v213_v20 = vld [vmem:[#allocation7 + $0x90] sm:$0xff]  ;;  %v212_v21 = vld [vmem:[#allocation7 + $0x88] sm:$0xff]  ;;  %v211_v22 = vld [vmem:[#allocation7 + $0x80] sm:$0xff] }
  0x3c   :  { %276 = vmatpush1.msra.mxu1 %v221_v11  ;;  %v210_v23 = vld [vmem:[#allocation7 + $0x78] sm:$0xff]  ;;  %v209_v24 = vld [vmem:[#allocation7 + $0x70] sm:$0xff]  ;;  %v208_v25 = vld [vmem:[#allocation7 + $0x68] sm:$0xff]  ;;  %p628_p10 = pnand %p627_p9, %p621_p6 }
  0x3d   :  { %490 = vmatmul.mubr.msk.f32.gmra.mxu0 %vm100_vm1, %v83_v12  ;;  %277 = vmatprep.subr.mxu1 %v220_v13  ;;  %v207_v26 = vld [vmem:[#allocation7 + $0x60] sm:$0xff]  ;;  %v206_v27 = vld [vmem:[#allocation7 + $0x58] sm:$0xff]  ;;  %v205_v28 = vld [vmem:[#allocation7 + $0x50] sm:$0xff] }
  0x3e   :  { %278 = vmatpush1.msra.mxu1 %v219_v14  ;;  %v204_v29 = vld [vmem:[#allocation7 + $0x48] sm:$0xff]  ;;  %v203_v30 = vld [vmem:[#allocation7 + $0x40] sm:$0xff]  ;;  %v202_v31 = vld [vmem:[#allocation7 + $0x38] sm:$0xff] }
  0x3f   :  { %279 = vmatprep.subr.mxu1 %v218_v15  ;;  %v201_v32 = vld [vmem:[#allocation7 + $0x30] sm:$0xff]  ;;  %v200_v33 = vld [vmem:[#allocation7 + $0x28] sm:$0xff]  ;;  %v199_v34 = vld [vmem:[#allocation7 + $0x20] sm:$0xff] }
  0x40   :  { %280 = vmatpush1.msra.mxu1 %v217_v16  ;;  %v198_v35 = vld [vmem:[#allocation7 + $0x18] sm:$0xff]  ;;  %v197_v36 = vld [vmem:[#allocation7 + $0x10] sm:$0xff]  ;;  %v196_v37 = vld [vmem:[#allocation7 + $0x8] sm:$0xff] }
  0x41   :  { %281 = vmatprep.subr.mxu1 %v216_v17  ;;  %v195_v38 = vld [vmem:[#allocation7] sm:$0xff]  ;;  %v258_v39 = vld [vmem:[#allocation7 + $0x1f8] sm:$0xff]  ;;  %v257_v40 = vld [vmem:[#allocation7 + $0x1f0] sm:$0xff] }
  0x42   :  { %282 = vmatpush1.msra.mxu1 %v215_v18  ;;  %v256_v41 = vld [vmem:[#allocation7 + $0x1e8] sm:$0xff]  ;;  %v255_v42 = vld [vmem:[#allocation7 + $0x1e0] sm:$0xff]  ;;  %v254_v43 = vld [vmem:[#allocation7 + $0x1d8] sm:$0xff] }
  0x43   :  { %283 = vmatprep.subr.mxu1 %v214_v19  ;;  %v253_v44 = vld [vmem:[#allocation7 + $0x1d0] sm:$0xff]  ;;  %v252_v45 = vld [vmem:[#allocation7 + $0x1c8] sm:$0xff]  ;;  %v251_v46 = vld [vmem:[#allocation7 + $0x1c0] sm:$0xff] }
  0x44   :  { %284 = vmatpush1.msra.mxu1 %v213_v20  ;;  %v250_v47 = vld [vmem:[#allocation7 + $0x1b8] sm:$0xff]  ;;  %v249_v48 = vld [vmem:[#allocation7 + $0x1b0] sm:$0xff]  ;;  %v248_v49 = vld [vmem:[#allocation7 + $0x1a8] sm:$0xff] }
  0x45   :  { %285 = vmatprep.subr.mxu1 %v212_v21  ;;  %v247_v50 = vld [vmem:[#allocation7 + $0x1a0] sm:$0xff]  ;;  %v246_v51 = vld [vmem:[#allocation7 + $0x198] sm:$0xff]  ;;  %v245_v52 = vld [vmem:[#allocation7 + $0x190] sm:$0xff] }
  0x46   :  { %286 = vmatpush1.msra.mxu1 %v211_v22  ;;  %v244_v53 = vld [vmem:[#allocation7 + $0x188] sm:$0xff]  ;;  %v243_v54 = vld [vmem:[#allocation7 + $0x180] sm:$0xff]  ;;  %v242_v55 = vld [vmem:[#allocation7 + $0x178] sm:$0xff] }
  0x47   :  { %287 = vmatprep.subr.mxu1 %v210_v23  ;;  %v241_v56 = vld [vmem:[#allocation7 + $0x170] sm:$0xff]  ;;  %v240_v57 = vld [vmem:[#allocation7 + $0x168] sm:$0xff]  ;;  %v239_v58 = vld [vmem:[#allocation7 + $0x160] sm:$0xff] }
  0x48   :  { %288 = vmatpush1.msra.mxu1 %v209_v24  ;;  %v238_v59 = vld [vmem:[#allocation7 + $0x158] sm:$0xff]  ;;  %v237_v60 = vld [vmem:[#allocation7 + $0x150] sm:$0xff]  ;;  %v236_v61 = vld [vmem:[#allocation7 + $0x148] sm:$0xff] }
  0x49   :  { %289 = vmatprep.subr.mxu1 %v208_v25  ;;  %v235_v62 = vld [vmem:[#allocation7 + $0x140] sm:$0xff]  ;;  %v234_v63 = vld [vmem:[#allocation7 + $0x138] sm:$0xff]  ;;  %v233_v0 = vld [vmem:[#allocation7 + $0x130] sm:$0xff] }
  0x4a   :  { %290 = vmatpush1.msra.mxu1 %v207_v26  ;;  %v232_v1 = vld [vmem:[#allocation7 + $0x128] sm:$0xff]  ;;  %v231_v2 = vld [vmem:[#allocation7 + $0x120] sm:$0xff]  ;;  %v230_v3 = vld [vmem:[#allocation7 + $0x118] sm:$0xff] }
  0x4b   :  { %291 = vmatprep.subr.mxu1 %v206_v27  ;;  %v229_v4 = vld [vmem:[#allocation7 + $0x110] sm:$0xff]  ;;  %v228_v5 = vld [vmem:[#allocation7 + $0x108] sm:$0xff]  ;;  %v227_v6 = vld [vmem:[#allocation7 + $0x100] sm:$0xff] }
  0x4c   :  { %292 = vmatpush1.msra.mxu1 %v205_v28  ;;  %v383_v7 = vld [vmem:[#allocation8 + $0xf8] sm:$0xff]  ;;  %v382_v9 = vld [vmem:[#allocation8 + $0xf0] sm:$0xff]  ;;  %v381_v11 = vld [vmem:[#allocation8 + $0xe8] sm:$0xff] }
  0x4d   :  { %293 = vmatprep.subr.mxu1 %v204_v29  ;;  %v367_v8 = vld [vmem:[#allocation8 + $0x78] sm:$0xff]  ;;  %492 = vmatprep.subr.mxu0 %v383_v7  ;;  %v366_v10 = vld [vmem:[#allocation8 + $0x70] sm:$0xff]  ;;  %v365_v12 = vld [vmem:[#allocation8 + $0x68] sm:$0xff] }
  0x4e   :  { %294 = vmatpush1.msra.mxu1 %v203_v30  ;;  %493 = vmatpush3.msra.mxu0 %v367_v8  ;;  %v380_v13 = vld [vmem:[#allocation8 + $0xe0] sm:$0xff]  ;;  %v379_v15 = vld [vmem:[#allocation8 + $0xd8] sm:$0xff]  ;;  %v378_v17 = vld [vmem:[#allocation8 + $0xd0] sm:$0xff] }
  0x4f   :  { %295 = vmatprep.subr.mxu1 %v202_v31  ;;  %494 = vmatprep.subr.mxu0 %v382_v9  ;;  %v364_v14 = vld [vmem:[#allocation8 + $0x60] sm:$0xff]  ;;  %v363_v16 = vld [vmem:[#allocation8 + $0x58] sm:$0xff]  ;;  %v362_v18 = vld [vmem:[#allocation8 + $0x50] sm:$0xff]  ;;  %v90_v31 = vlaneseq }
  0x50   :  { %296 = vmatpush1.msra.mxu1 %v201_v32  ;;  %495 = vmatpush3.msra.mxu0 %v366_v10  ;;  %v377_v19 = vld [vmem:[#allocation8 + $0xc8] sm:$0xff]  ;;  %v376_v21 = vld [vmem:[#allocation8 + $0xc0] sm:$0xff]  ;;  %v375_v23 = vld [vmem:[#allocation8 + $0xb8] sm:$0xff] }
  0x51   :  { %297 = vmatprep.subr.mxu1 %v200_v33  ;;  %496 = vmatprep.subr.mxu0 %v381_v11  ;;  %v361_v20 = vld [vmem:[#allocation8 + $0x48] sm:$0xff]  ;;  %v360_v22 = vld [vmem:[#allocation8 + $0x40] sm:$0xff]  ;;  %v359_v24 = vld [vmem:[#allocation8 + $0x38] sm:$0xff]  ;;  %v91_v32 = vshrl.u32 %v90_v31, 7 }
  0x52   :  { %298 = vmatpush1.msra.mxu1 %v199_v34  ;;  %497 = vmatpush3.msra.mxu0 %v365_v12  ;;  %v374_v25 = vld [vmem:[#allocation8 + $0xb0] sm:$0xff]  ;;  %v373_v27 = vld [vmem:[#allocation8 + $0xa8] sm:$0xff]  ;;  %v372_v29 = vld [vmem:[#allocation8 + $0xa0] sm:$0xff] }
  0x53   :  { %299 = vmatprep.subr.mxu1 %v198_v35  ;;  %498 = vmatprep.subr.mxu0 %v380_v13  ;;  %v358_v26 = vld [vmem:[#allocation8 + $0x30] sm:$0xff]  ;;  %v357_v28 = vld [vmem:[#allocation8 + $0x28] sm:$0xff]  ;;  %v356_v30 = vld [vmem:[#allocation8 + $0x20] sm:$0xff]  ;;  %v92_v33 = vsub.s32 0, %v91_v32  ;;  %v96_v35 = vsub.s32 1, %v91_v32 }
  0x54   :  { %300 = vmatpush1.msra.mxu1 %v197_v36  ;;  %499 = vmatpush3.msra.mxu0 %v364_v14  ;;  %v88_v34 = vld [vmem:[%s741_s2] sm:$0x3] }
  0x55   :  { %301 = vmatprep.subr.mxu1 %v196_v37  ;;  %500 = vmatprep.subr.mxu0 %v379_v15  ;;  %v93_v36 = vrot.slane %v88_v34, %v92_v33  ;;  %v97_v37 = vrot.slane %v88_v34, %v96_v35  ;;  %v491_v10 = vld [vmem:[%s745_s6] ss:$0 sm:$0xff] }
  0x56   :  { %302 = vmatpush1.msra.mxu1 %v195_v38  ;;  %501 = vmatpush3.msra.mxu0 %v363_v16 }
  0x57   :  { %303 = vmatprep.subr.mxu1 %v258_v39  ;;  %502 = vmatprep.subr.mxu0 %v378_v17 }
  0x58   :  { %304 = vmatpush2.msra.mxu1 %v257_v40  ;;  %503 = vmatpush3.msra.mxu0 %v362_v18 }
  0x59   :  { %305 = vmatprep.subr.mxu1 %v256_v41  ;;  %504 = vmatprep.subr.mxu0 %v377_v19 }
  0x5a   :  { %306 = vmatpush2.msra.mxu1 %v255_v42  ;;  %505 = vmatpush3.msra.mxu0 %v361_v20 }
  0x5b   :  { %307 = vmatprep.subr.mxu1 %v254_v43  ;;  %506 = vmatprep.subr.mxu0 %v376_v21 }
  0x5c   :  { %308 = vmatpush2.msra.mxu1 %v253_v44  ;;  %507 = vmatpush3.msra.mxu0 %v360_v22 }
  0x5d   :  { %309 = vmatprep.subr.mxu1 %v252_v45  ;;  %508 = vmatprep.subr.mxu0 %v375_v23 }
  0x5e   :  { %310 = vmatpush2.msra.mxu1 %v251_v46  ;;  %509 = vmatpush3.msra.mxu0 %v359_v24 }
  0x5f   :  { %311 = vmatprep.subr.mxu1 %v250_v47  ;;  %510 = vmatprep.subr.mxu0 %v374_v25 }
  0x60   :  { %312 = vmatpush2.msra.mxu1 %v249_v48  ;;  %511 = vmatpush3.msra.mxu0 %v358_v26 }
  0x61   :  { %313 = vmatprep.subr.mxu1 %v248_v49  ;;  %512 = vmatprep.subr.mxu0 %v373_v27 }
  0x62   :  { %314 = vmatpush2.msra.mxu1 %v247_v50  ;;  %513 = vmatpush3.msra.mxu0 %v357_v28  ;;  %v371_v50 = vld [vmem:[#allocation8 + $0x98] sm:$0xff] }
  0x63   :  { %315 = vmatprep.subr.mxu1 %v246_v51  ;;  %514 = vmatprep.subr.mxu0 %v372_v29  ;;  %v355_v51 = vld [vmem:[#allocation8 + $0x18] sm:$0xff] }
  0x64   :  { %316 = vmatpush2.msra.mxu1 %v245_v52  ;;  %515 = vmatpush3.msra.mxu0 %v356_v30  ;;  %v370_v52 = vld [vmem:[#allocation8 + $0x90] sm:$0xff] }
  0x65   :  { %317 = vmatprep.subr.mxu1 %v244_v53  ;;  %516 = vmatprep.subr.mxu0 %v371_v50  ;;  %v354_v53 = vld [vmem:[#allocation8 + $0x10] sm:$0xff] }
  0x66   :  { %318 = vmatpush2.msra.mxu1 %v243_v54  ;;  %517 = vmatpush3.msra.mxu0 %v355_v51  ;;  %v369_v54 = vld [vmem:[#allocation8 + $0x88] sm:$0xff] }
  0x67   :  { %319 = vmatprep.subr.mxu1 %v242_v55  ;;  %518 = vmatprep.subr.mxu0 %v370_v52  ;;  %v353_v55 = vld [vmem:[#allocation8 + $0x8] sm:$0xff] }
  0x68   :  { %320 = vmatpush2.msra.mxu1 %v241_v56  ;;  %519 = vmatpush3.msra.mxu0 %v354_v53  ;;  %v368_v56 = vld [vmem:[#allocation8 + $0x80] sm:$0xff] }
  0x69   :  { %321 = vmatprep.subr.mxu1 %v240_v57  ;;  %520 = vmatprep.subr.mxu0 %v369_v54  ;;  %v352_v57 = vld [vmem:[#allocation8] sm:$0xff] }
  0x6a   :  { %322 = vmatpush2.msra.mxu1 %v239_v58  ;;  %521 = vmatpush3.msra.mxu0 %v353_v55  ;;  %v259_v58 = vld [vmem:[%s743_s4] sm:$0x3] }
  0x6b   :  { %323 = vmatprep.subr.mxu1 %v238_v59  ;;  %522 = vmatprep.subr.mxu0 %v368_v56  ;;  %v264_v59 = vrot.slane %v259_v58, %v92_v33 }
  0x6c   :  { %324 = vmatpush2.msra.mxu1 %v237_v60  ;;  %523 = vmatpush3.msra.mxu0 %v352_v57  ;;  %v268_v60 = vrot.slane %v259_v58, %v96_v35 }
  0x6d   :  { %325 = vmatprep.subr.mxu1 %v236_v61 }
  0x6e   :  { %326 = vmatpush2.msra.mxu1 %v235_v62 }
  0x6f   :  { %327 = vmatprep.subr.mxu1 %v234_v63 }
  0x70   :  { %328 = vmatpush2.msra.mxu1 %v233_v0 }
  0x71   :  { %329 = vmatprep.subr.mxu1 %v232_v1 }
  0x72   :  { %330 = vmatpush2.msra.mxu1 %v231_v2 }
  0x73   :  { %331 = vmatprep.subr.mxu1 %v230_v3 }
  0x74   :  { %332 = vmatpush2.msra.mxu1 %v229_v4 }
  0x75   :  { %333 = vmatprep.subr.mxu1 %v228_v5 }
  0x76   :  { %334 = vmatpush2.msra.mxu1 %v227_v6 }
  0xf9   :  { %v180_v38 = vpop.f32.mrf.mxu0 }
  0xfa   :  { %v181_v39 = vadd.f32 %v180_v38, %v93_v36 }
  0xfb   :  { %v182_v40 = vpop.f32.mrf.mxu0 }
  0xfc   :  { %v183_v41 = vadd.f32 %v182_v40, %v97_v37  ;;  %v191_v44 = vmax.f32 %v181_v39, 0.0 }
  0xfd   :  { %v186_v42 = vpop.f32.mrf.mxu0 }
  0xfe   :  { %v192_v43 = vmax.f32 %v183_v41, 0.0  ;;  %v187_v45 = vadd.f32 %v186_v42, %v93_v36 }
  0xff   :  { %v188_v46 = vpop.f32.mrf.mxu0 }
 0x100   :  { %v189_v47 = vadd.f32 %v188_v46, %v97_v37  ;;  %335 = vmatprep.mubr.f32.mxu1 %v192_v43  ;;  %v193_v49 = vmax.f32 %v187_v45, 0.0 }
 0x101   :  { %336 = vmatmul.mubr.f32.vlgmr.msra.gmra.mxu1 %v191_v44 }
 0x102   :  { %v194_v48 = vmax.f32 %v189_v47, 0.0 }
 0x104   :  { %341 = vmatprep.mubr.f32.mxu1 %v194_v48 }
 0x105   :  { %342 = vmatmul.mubr.f32.gmra.mxu1 %v193_v49 }
 0x1c1   :  { %v337_v61 = vpop.f32.mrf.mxu1 }
 0x1c2   :  { %v338_v62 = vadd.f32 %v337_v61, %v264_v59 }
 0x1c3   :  { %v339_v63 = vpop.f32.mrf.mxu1 }
 0x1c4   :  { %v340_v0 = vadd.f32 %v339_v63, %v268_v60  ;;  %v348_v3 = vmax.f32 %v338_v62, 0.0 }
 0x1c5   :  { %v343_v1 = vpop.f32.mrf.mxu1 }
 0x1c6   :  { %v349_v2 = vmax.f32 %v340_v0, 0.0  ;;  %v344_v4 = vadd.f32 %v343_v1, %v264_v59 }
 0x1c7   :  { %v345_v5 = vpop.f32.mrf.mxu1 }
 0x1c8   :  { %v346_v6 = vadd.f32 %v345_v5, %v268_v60  ;;  %455 = vmatprep.mubr.f32.mxu0 %v349_v2  ;;  %v350_v8 = vmax.f32 %v344_v4, 0.0 }
 0x1c9   :  { %456 = vmatmul.mubr.f32.vlgmr.msra.gmra.mxu0 %v348_v3 }
 0x1ca   :  { %v351_v7 = vmax.f32 %v346_v6, 0.0 }
 0x1cc   :  { %460 = vmatprep.mubr.f32.mxu0 %v351_v7 }
 0x1cd   :  { %461 = vmatmul.mubr.f32.gmra.mxu0 %v350_v8 }
 0x289   :  { %v524_v9 = vpop.f32.mrf.mxu0 }
 0x28b   :  { %v525_v11 = vpop.f32.mrf.mxu0 }
 0x28c   :  { %v526_v12 = vadd.f32 %v525_v11, %v524_v9 }
 0x28d   :  { %v527_v13 = vpop.f32.mrf.mxu0 }
 0x28e   :  { %v458_v14 = vadd.f32 %v526_v12, %v491_v10 }
 0x28f   :  { %v528_v15 = vpop.f32.mrf.mxu0 }
 0x290   :  { %466 = vst [vmem:[#allocation10] sm:$0xff] %v458_v14  ;;  %v529_v16 = vadd.f32 %v528_v15, %v527_v13 }
 0x292   :  { %v463_v17 = vadd.f32 %v529_v16, %v491_v10 }
 0x294   :  { %467 = vst [vmem:[#allocation10 + $0x8] sm:$0xff] %v463_v17 }
 0x295   :  { %631 = shalt.err (!%p628_p10)
}
 0x296   :  { %479 = dma.vmem_to_hbm [thread:$0]  %s474_s26, 256, %s746_s7, [#allocation4], %s652_s11, %s652_s11, %s653_s12  }
 0x297   :  { %646 = dma.done.wait [#allocation4], 256  }
 0x298   :  { %647 = vsyncadd [#allocation4], 4294967040 }
 0x299   :  { %483 = vsyncpa [#allocation3], 1 }
 0x29a   :  { %484 = vsyncpa [#allocation6], 1 }
 0x29b   :  { %485 = vsyncpa [#allocation9], 1 }
 0x29c   :  { %486 = vsyncpa [#allocation4], 1 }

</bundles_post_ra>
